<compile_context>
chip_gen: v7x
topology: tpu7x:2x2x1
jax: 0.10.0
libtpu: 0.0.40
codegen_flags: <defaults>
</compile_context>

<pallas_src>
import functools

import jax
import jax.numpy as jnp
from jax import lax
from jax.experimental import pallas as pl
from jax.experimental.pallas import tpu as pltpu

# ---------------- problem sizes (small, but MXU/lane aligned) ---------------
B = 2        # batch
P = 8        # prompt (encoder) length
T = 16       # candidate / label (decoder) length
D = 128      # hidden size  (lane-dense; full MXU contraction depth on v5e)
V = 512      # vocab size
N = B * T    # flattened decoder-token count

TR = 16      # token-row tile (one full native bf16 (16, 128) tile)
TV = 256     # vocab tile (256-multiple for v6e/v7x MXU; fine on v5e too)


# ---------------- fused Pallas kernel: projection + SLiC loss ----------------
def _slic_fused_kernel(lab_ref, hdiff_ref, hbase_ref, w_ref, out_ref,
                       m_ref, l_ref, corr_ref, calib_ref, *,
                       alpha, n_tok, vocab):
    j = pl.program_id(1)
    tr = hdiff_ref.shape[0]
    tv = w_ref.shape[1]

    @pl.when(j == 0)
    def _init():
        m_ref[...] = jnp.full(m_ref.shape, -jnp.inf, jnp.float32)
        l_ref[...] = jnp.zeros(l_ref.shape, jnp.float32)
        corr_ref[...] = jnp.zeros(corr_ref.shape, jnp.float32)
        calib_ref[...] = jnp.zeros(calib_ref.shape, jnp.float32)

    # One stacked bf16 MXU matmul per V tile, f32 accumulation:
    #   rows [0, tr) : (E_dec[neg] - E_dec[pos]) @ W_tile == neg - pos logits
    #                  (the pooled-prompt contribution cancels algebraically)
    #   rows [tr,2tr): (E_dec[labels] + pooled) @ W_tile == base-model logits
    h2 = jnp.concatenate([hdiff_ref[...], hbase_ref[...]], axis=0)   # (2tr, D)
    logits = jnp.dot(h2, w_ref[...],
                     preferred_element_type=jnp.float32)             # (2tr, tv)
    diff = logits[:tr, :]
    base = logits[tr:, :]

    # calibration (rank) loss: running per-row relu-sum over V tiles (f32 VPU)
    calib_ref[...] += jnp.sum(jnp.maximum(diff, 0.0), axis=-1, keepdims=True)

    # online logsumexp over V tiles for the CE term
    m_prev = m_ref[...]
    m_new = jnp.maximum(m_prev, jnp.max(base, axis=-1, keepdims=True))
    l_ref[...] = (jnp.exp(m_prev - m_new) * l_ref[...]
                  + jnp.sum(jnp.exp(base - m_new), axis=-1, keepdims=True))
    m_ref[...] = m_new

    # correct-class logit: iota mask against this V tile (no W.T[labels]
    # gather, no extra (N, D) operand) -- runs on VPU slack.
    v_ids = lax.broadcasted_iota(jnp.int32, (tr, tv), 1) + j * tv
    corr_ref[...] += jnp.sum(jnp.where(v_ids == lab_ref[...], base, 0.0),
                             axis=-1, keepdims=True)

    @pl.when(j == pl.num_programs(1) - 1)
    def _finalize():
        ce_rows = m_ref[...] + jnp.log(l_ref[...]) - corr_ref[...]   # (tr, 1)
        contrib = (calib_ref[...] * (1.0 / float(n_tok * vocab))
                   + (float(alpha) / float(n_tok)) * ce_rows)        # (tr, 1)
        # lane-dense (tr, 128) output block; wrapper reads column 0.
        out_ref[...] = jnp.broadcast_to(contrib, out_ref.shape)


def slic_fused_loss(h_diff, h_base, w, labels_flat, alpha):
    n, d = h_base.shape
    v = w.shape[1]
    kernel = functools.partial(_slic_fused_kernel, alpha=float(alpha),
                               n_tok=n, vocab=v)
    out = pl.pallas_call(
        kernel,
        out_shape=jax.ShapeDtypeStruct((n, 128), jnp.float32),
        grid_spec=pltpu.PrefetchScalarGridSpec(
            num_scalar_prefetch=0,
            grid=(n // TR, v // TV),            # (rows, vocab); vocab last
            in_specs=[
                pl.BlockSpec((TR, 1), lambda i, j: (i, 0)),   # labels (int32)
                pl.BlockSpec((TR, d), lambda i, j: (i, 0)),   # h_diff (bf16)
                pl.BlockSpec((TR, d), lambda i, j: (i, 0)),   # h_base (bf16)
                pl.BlockSpec((d, TV), lambda i, j: (0, j)),   # W      (bf16)
            ],
            out_specs=pl.BlockSpec((TR, 128), lambda i, j: (i, 0)),
            scratch_shapes=[
                pltpu.VMEM((TR, 1), jnp.float32),   # running max   (m)
                pltpu.VMEM((TR, 1), jnp.float32),   # running sumexp(l)
                pltpu.VMEM((TR, 1), jnp.float32),   # correct-class logit
                pltpu.VMEM((TR, 1), jnp.float32),   # calibration relu-sum
            ]),
        compiler_params=pltpu.CompilerParams(
            # row axis splits across v7x's 2 TCs; vocab axis is the reduction.
            dimension_semantics=("parallel", "arbitrary"),
            # raise above v5e's 16 MiB default; production: sweep per chip.
            vmem_limit_bytes=32 * 1024 * 1024),
    )(labels_flat.reshape(n, 1), h_diff, h_base, w)
    return jnp.sum(out[:, 0])


# ---------------- synthetic base model (deterministic params, glue in JAX) --
def init_params(key):
    k1, k2, k3 = jax.random.split(key, 3)
    return {
        "E_enc": jax.random.normal(k1, (V, D), jnp.float32) * 0.05,
        "E_dec": jax.random.normal(k2, (V, D), jnp.float32) * 0.05,
        "W": jax.random.normal(k3, (D, V), jnp.float32) * 0.05,
    }


def slic_forward(params, prompt, prompt_attn, positive_candidate,
                 negative_candidate, labels, alpha=0.5):
    # Shared encoder pooling, computed ONCE (identical across the module's
    # three base_model calls).  f32 elementwise; bf16 only at the MXU boundary.
    enc = params["E_enc"][prompt]                                   # (B, P, D)
    mask = prompt_attn[..., None].astype(jnp.float32)               # (B, P, 1)
    pooled = (enc * mask).sum(1) / jnp.maximum(mask.sum(1), 1.0)    # (B, D)

    e_dec = params["E_dec"]
    # pooled-prompt contribution cancels in (neg_logits - pos_logits)
    h_diff = (e_dec[negative_candidate]
              - e_dec[positive_candidate]).reshape(N, D)            # (N, D)
    h_base = (e_dec[labels] + pooled[:, None, :]).reshape(N, D)     # (N, D)

    # TODO(synk): at production sizes the embedding gathers + pooling above
    # should be pulled into the kernel (scalar-prefetched ids / manual DMA)
    # to avoid separate XLA gather launches; negligible at this toy size.
    return slic_fused_loss(h_diff.astype(jnp.bfloat16),
                           h_base.astype(jnp.bfloat16),
                           params["W"].astype(jnp.bfloat16),
                           labels.reshape(-1).astype(jnp.int32),
                           alpha)


# ---------------- pure-JAX f32 reference (mirrors the 3-call structure) -----
def slic_reference(params, prompt, prompt_attn, pos_c, neg_c, labels,
                   alpha=0.5):
    def logits_fn(dec_labels):
        enc = params["E_enc"][prompt]
        mask = prompt_attn[..., None].astype(jnp.float32)
        pooled = (enc * mask).sum(1) / jnp.maximum(mask.sum(1), 1.0)
        dec = params["E_dec"][dec_labels]
        h = dec + pooled[:, None, :]
        return jnp.einsum("btd,dv->btv", h, params["W"])

    pos = logits_fn(pos_c)
    neg = logits_fn(neg_c)
    base = logits_fn(labels)
    calibration = jnp.mean(jax.nn.relu(-pos + neg))
    lse = jax.nn.logsumexp(base, axis=-1)
    correct = jnp.take_along_axis(base, labels[..., None], axis=-1)[..., 0]
    ce = jnp.mean(lse - correct)
    return calibration + alpha * ce


# ---------------- main -------------------------------------------------------
if __name__ == "__main__":
    key = jax.random.PRNGKey(0)
    kp, kpos, kneg, klab, kpar = jax.random.split(key, 5)

    params = init_params(kpar)
    prompt = jax.random.randint(kp, (B, P), 0, V, dtype=jnp.int32)
    prompt_attn = jnp.ones((B, P), jnp.int32).at[1, P - 2:].set(0)
    positive_candidate = jax.random.randint(kpos, (B, T), 0, V, dtype=jnp.int32)
    negative_candidate = jax.random.randint(kneg, (B, T), 0, V, dtype=jnp.int32)
    labels = jax.random.randint(klab, (B, T), 0, V, dtype=jnp.int32)

    out = slic_forward(params, prompt, prompt_attn, positive_candidate,
                       negative_candidate, labels, alpha=0.5)
    out = jax.block_until_ready(out)

    ref = slic_reference(params, prompt, prompt_attn, positive_candidate,
                         negative_candidate, labels, alpha=0.5)
    # bf16 MXU operands vs f32 reference -> slightly loosened tolerance.
    assert jnp.allclose(out, ref, atol=1e-2, rtol=1e-2), (out, ref)

    print("KERNEL_OK")
</pallas_src>

<mosaic_0001>
module attributes {stable_mosaic.version = 11 : i64} {
  func.func @_slic_fused_kernel(%arg0: i32, %arg1: i32, %arg2: memref<16x1xi32, #tpu.memory_space<vmem>>, %arg3: memref<16x128xbf16, #tpu.memory_space<vmem>>, %arg4: memref<16x128xbf16, #tpu.memory_space<vmem>>, %arg5: memref<128x256xbf16, #tpu.memory_space<vmem>>, %arg6: memref<16x128xf32, #tpu.memory_space<vmem>>, %arg7: memref<16x1xf32, #tpu.memory_space<vmem>>, %arg8: memref<16x1xf32, #tpu.memory_space<vmem>>, %arg9: memref<16x1xf32, #tpu.memory_space<vmem>>, %arg10: memref<16x1xf32, #tpu.memory_space<vmem>>) attributes {dimension_semantics = [#tpu.dimension_semantics<parallel>, #tpu.dimension_semantics<arbitrary>], iteration_bounds = array<i64: 2, 2>, scalar_prefetch = 0 : i64, scratch_operands = 4 : i64, tpu.core_type = #tpu.core_type<tc>, window_params = [{transform_indices = @transform_0, window_bounds = array<i64: 16, 1>}, {transform_indices = @transform_1, window_bounds = array<i64: 16, 128>}, {transform_indices = @transform_2, window_bounds = array<i64: 16, 128>}, {transform_indices = @transform_3, window_bounds = array<i64: 128, 256>}, {transform_indices = @transform_4, window_bounds = array<i64: 16, 128>}]} {
    %c0_i32 = arith.constant 0 : i32
    %0 = arith.cmpi eq, %arg1, %c0_i32 : i32
    %1 = arith.extui %0 : i1 to i32
    %c0_i32_0 = arith.constant 0 : i32
    %2 = arith.cmpi ne, %1, %c0_i32_0 : i32
    scf.if %2 {
      %cst_31 = arith.constant 0xFF800000 : f32
      %50 = vector.broadcast %cst_31 : f32 to vector<16x1xf32>
      %c0_32 = arith.constant 0 : index
      %c0_33 = arith.constant 0 : index
      %51 = vector.load %arg7[%c0_32, %c0_33] : memref<16x1xf32, #tpu.memory_space<vmem>>, vector<16x1xf32>
      tpu.vector_store %arg7[%c0_32, %c0_33], %50 {strides = array<i32>} : memref<16x1xf32, #tpu.memory_space<vmem>>, vector<16x1xf32>,
      %cst_34 = arith.constant 0.000000e+00 : f32
      %52 = vector.broadcast %cst_34 : f32 to vector<16x1xf32>
      %c0_35 = arith.constant 0 : index
      %c0_36 = arith.constant 0 : index
      %53 = vector.load %arg8[%c0_35, %c0_36] : memref<16x1xf32, #tpu.memory_space<vmem>>, vector<16x1xf32>
      tpu.vector_store %arg8[%c0_35, %c0_36], %52 {strides = array<i32>} : memref<16x1xf32, #tpu.memory_space<vmem>>, vector<16x1xf32>,
      %cst_37 = arith.constant 0.000000e+00 : f32
      %54 = vector.broadcast %cst_37 : f32 to vector<16x1xf32>
      %c0_38 = arith.constant 0 : index
      %c0_39 = arith.constant 0 : index
      %55 = vector.load %arg9[%c0_38, %c0_39] : memref<16x1xf32, #tpu.memory_space<vmem>>, vector<16x1xf32>
      tpu.vector_store %arg9[%c0_38, %c0_39], %54 {strides = array<i32>} : memref<16x1xf32, #tpu.memory_space<vmem>>, vector<16x1xf32>,
      %cst_40 = arith.constant 0.000000e+00 : f32
      %56 = vector.broadcast %cst_40 : f32 to vector<16x1xf32>
      %c0_41 = arith.constant 0 : index
      %c0_42 = arith.constant 0 : index
      %57 = vector.load %arg10[%c0_41, %c0_42] : memref<16x1xf32, #tpu.memory_space<vmem>>, vector<16x1xf32>
      tpu.vector_store %arg10[%c0_41, %c0_42], %56 {strides = array<i32>} : memref<16x1xf32, #tpu.memory_space<vmem>>, vector<16x1xf32>,
    } else {
    }
    %c0 = arith.constant 0 : index
    %c0_1 = arith.constant 0 : index
    %3 = vector.load %arg3[%c0, %c0_1] : memref<16x128xbf16, #tpu.memory_space<vmem>>, vector<16x128xbf16>
    %c0_2 = arith.constant 0 : index
    %c0_3 = arith.constant 0 : index
    %4 = vector.load %arg4[%c0_2, %c0_3] : memref<16x128xbf16, #tpu.memory_space<vmem>>, vector<16x128xbf16>
    %5 = tpu.concatenate %3, %4 in 0 : vector<16x128xbf16>, vector<16x128xbf16> -> vector<32x128xbf16>
    %c0_4 = arith.constant 0 : index
    %c0_5 = arith.constant 0 : index
    %6 = vector.load %arg5[%c0_4, %c0_5] : memref<128x256xbf16, #tpu.memory_space<vmem>>, vector<128x256xbf16>
    %cst = arith.constant dense<0.000000e+00> : vector<32x256xf32>
    %7 = tpu.matmul %5, %6, %cst {dimension_numbers = #tpu.dot_dimension_numbers<[1], [0], [0], [1], [0, 0, 1, 1], [], []>} : vector<32x128xbf16>, vector<128x256xbf16>, vector<32x256xf32> -> vector<32x256xf32>
    %8 = vector.extract_strided_slice %7 {offsets = [0, 0], sizes = [16, 256], strides = [1, 1]} : vector<32x256xf32> to vector<16x256xf32>
    %9 = vector.extract_strided_slice %7 {offsets = [16, 0], sizes = [16, 256], strides = [1, 1]} : vector<32x256xf32> to vector<16x256xf32>
    %c0_6 = arith.constant 0 : index
    %c0_7 = arith.constant 0 : index
    %10 = vector.load %arg10[%c0_6, %c0_7] : memref<16x1xf32, #tpu.memory_space<vmem>>, vector<16x1xf32>
    %cst_8 = arith.constant 0.000000e+00 : f32
    %11 = vector.broadcast %cst_8 : f32 to vector<16x256xf32>
    %12 = arith.maximumf %8, %11 : vector<16x256xf32>
    %cst_9 = arith.constant dense<0.000000e+00> : vector<16xf32>
    %13 = vector.multi_reduction <add>, %12, %cst_9 [1] : vector<16x256xf32> to vector<16xf32>
    %14 = vector.shape_cast %13 : vector<16xf32> to vector<16x1xf32>
    %15 = arith.addf %10, %14 : vector<16x1xf32>
    %c0_10 = arith.constant 0 : index
    %c0_11 = arith.constant 0 : index
    %16 = vector.load %arg10[%c0_10, %c0_11] : memref<16x1xf32, #tpu.memory_space<vmem>>, vector<16x1xf32>
    tpu.vector_store %arg10[%c0_10, %c0_11], %15 {strides = array<i32>} : memref<16x1xf32, #tpu.memory_space<vmem>>, vector<16x1xf32>,
    %c0_12 = arith.constant 0 : index
    %c0_13 = arith.constant 0 : index
    %17 = vector.load %arg7[%c0_12, %c0_13] : memref<16x1xf32, #tpu.memory_space<vmem>>, vector<16x1xf32>
    %cst_14 = arith.constant dense<0xFF800000> : vector<16xf32>
    %18 = vector.multi_reduction <maximumf>, %9, %cst_14 [1] : vector<16x256xf32> to vector<16xf32>
    %19 = vector.shape_cast %18 : vector<16xf32> to vector<16x1xf32>
    %20 = arith.maximumf %17, %19 : vector<16x1xf32>
    %21 = arith.subf %17, %20 : vector<16x1xf32>
    %22 = math.exp %21 : vector<16x1xf32>
    %c0_15 = arith.constant 0 : index
    %c0_16 = arith.constant 0 : index
    %23 = vector.load %arg8[%c0_15, %c0_16] : memref<16x1xf32, #tpu.memory_space<vmem>>, vector<16x1xf32>
    %24 = arith.mulf %22, %23 : vector<16x1xf32>
    %25 = vector.broadcast %20 : vector<16x1xf32> to vector<16x256xf32>
    %26 = arith.subf %9, %25 : vector<16x256xf32>
    %27 = math.exp %26 : vector<16x256xf32>
    %cst_17 = arith.constant dense<0.000000e+00> : vector<16xf32>
    %28 = vector.multi_reduction <add>, %27, %cst_17 [1] : vector<16x256xf32> to vector<16xf32>
    %29 = vector.shape_cast %28 : vector<16xf32> to vector<16x1xf32>
    %30 = arith.addf %24, %29 : vector<16x1xf32>
    %c0_18 = arith.constant 0 : index
    %c0_19 = arith.constant 0 : index
    %31 = vector.load %arg8[%c0_18, %c0_19] : memref<16x1xf32, #tpu.memory_space<vmem>>, vector<16x1xf32>
    tpu.vector_store %arg8[%c0_18, %c0_19], %30 {strides = array<i32>} : memref<16x1xf32, #tpu.memory_space<vmem>>, vector<16x1xf32>,
    %c0_20 = arith.constant 0 : index
    %c0_21 = arith.constant 0 : index
    %32 = vector.load %arg7[%c0_20, %c0_21] : memref<16x1xf32, #tpu.memory_space<vmem>>, vector<16x1xf32>
    tpu.vector_store %arg7[%c0_20, %c0_21], %20 {strides = array<i32>} : memref<16x1xf32, #tpu.memory_space<vmem>>, vector<16x1xf32>,
    %33 = tpu.iota {dimensions = array<i32: 1>} : vector<16x256xi32>
    %c256_i32 = arith.constant 256 : i32
    %34 = arith.muli %arg1, %c256_i32 : i32
    %35 = vector.broadcast %34 : i32 to vector<16x256xi32>
    %36 = arith.addi %33, %35 : vector<16x256xi32>
    %c0_22 = arith.constant 0 : index
    %c0_23 = arith.constant 0 : index
    %37 = vector.load %arg9[%c0_22, %c0_23] : memref<16x1xf32, #tpu.memory_space<vmem>>, vector<16x1xf32>
    %c0_24 = arith.constant 0 : index
    %c0_25 = arith.constant 0 : index
    %38 = vector.load %arg2[%c0_24, %c0_25] : memref<16x1xi32, #tpu.memory_space<vmem>>, vector<16x1xi32>
    %39 = vector.broadcast %38 : vector<16x1xi32> to vector<16x256xi32>
    %40 = arith.cmpi eq, %36, %39 : vector<16x256xi32>
    %cst_26 = arith.constant 0.000000e+00 : f32
    %41 = vector.broadcast %cst_26 : f32 to vector<16x256xf32>
    %42 = arith.select %40, %9, %41 : vector<16x256xi1>, vector<16x256xf32>
    %cst_27 = arith.constant dense<0.000000e+00> : vector<16xf32>
    %43 = vector.multi_reduction <add>, %42, %cst_27 [1] : vector<16x256xf32> to vector<16xf32>
    %44 = vector.shape_cast %43 : vector<16xf32> to vector<16x1xf32>
    %45 = arith.addf %37, %44 : vector<16x1xf32>
    %c0_28 = arith.constant 0 : index
    %c0_29 = arith.constant 0 : index
    %46 = vector.load %arg9[%c0_28, %c0_29] : memref<16x1xf32, #tpu.memory_space<vmem>>, vector<16x1xf32>
    tpu.vector_store %arg9[%c0_28, %c0_29], %45 {strides = array<i32>} : memref<16x1xf32, #tpu.memory_space<vmem>>, vector<16x1xf32>,
    %c1_i32 = arith.constant 1 : i32
    %47 = arith.cmpi eq, %arg1, %c1_i32 : i32
    %48 = arith.extui %47 : i1 to i32
    %c0_i32_30 = arith.constant 0 : i32
    %49 = arith.cmpi ne, %48, %c0_i32_30 : i32
    scf.if %49 {
      %c0_31 = arith.constant 0 : index
      %c0_32 = arith.constant 0 : index
      %50 = vector.load %arg7[%c0_31, %c0_32] : memref<16x1xf32, #tpu.memory_space<vmem>>, vector<16x1xf32>
      %c0_33 = arith.constant 0 : index
      %c0_34 = arith.constant 0 : index
      %51 = vector.load %arg8[%c0_33, %c0_34] : memref<16x1xf32, #tpu.memory_space<vmem>>, vector<16x1xf32>
      %52 = math.log %51 : vector<16x1xf32>
      %53 = arith.addf %50, %52 : vector<16x1xf32>
      %c0_35 = arith.constant 0 : index
      %c0_36 = arith.constant 0 : index
      %54 = vector.load %arg9[%c0_35, %c0_36] : memref<16x1xf32, #tpu.memory_space<vmem>>, vector<16x1xf32>
      %55 = arith.subf %53, %54 : vector<16x1xf32>
      %c0_37 = arith.constant 0 : index
      %c0_38 = arith.constant 0 : index
      %56 = vector.load %arg10[%c0_37, %c0_38] : memref<16x1xf32, #tpu.memory_space<vmem>>, vector<16x1xf32>
      %cst_39 = arith.constant 6.10351563E-5 : f32
      %57 = vector.broadcast %cst_39 : f32 to vector<16x1xf32>
      %58 = arith.mulf %56, %57 : vector<16x1xf32>
      %cst_40 = arith.constant 1.562500e-02 : f32
      %59 = vector.broadcast %cst_40 : f32 to vector<16x1xf32>
      %60 = arith.mulf %59, %55 : vector<16x1xf32>
      %61 = arith.addf %58, %60 : vector<16x1xf32>
      %62 = vector.shape_cast %61 : vector<16x1xf32> to vector<16x1xf32>
      %63 = vector.broadcast %62 : vector<16x1xf32> to vector<16x128xf32>
      %c0_41 = arith.constant 0 : index
      %c0_42 = arith.constant 0 : index
      %64 = vector.load %arg6[%c0_41, %c0_42] : memref<16x128xf32, #tpu.memory_space<vmem>>, vector<16x128xf32>
      tpu.vector_store %arg6[%c0_41, %c0_42], %63 {strides = array<i32>} : memref<16x128xf32, #tpu.memory_space<vmem>>, vector<16x128xf32>,
    } else {
    }
    return
  }
  func.func @transform_0(%arg0: i32, %arg1: i32) -> (i32, i32) {
    %c0_i32 = arith.constant 0 : i32
    %c0_i32_0 = arith.constant 0 : i32
    return %arg0, %c0_i32 : i32, i32
  }
  func.func @transform_1(%arg0: i32, %arg1: i32) -> (i32, i32) {
    %c0_i32 = arith.constant 0 : i32
    %c0_i32_0 = arith.constant 0 : i32
    return %arg0, %c0_i32 : i32, i32
  }
  func.func @transform_2(%arg0: i32, %arg1: i32) -> (i32, i32) {
    %c0_i32 = arith.constant 0 : i32
    %c0_i32_0 = arith.constant 0 : i32
    return %arg0, %c0_i32 : i32, i32
  }
  func.func @transform_3(%arg0: i32, %arg1: i32) -> (i32, i32) {
    %c0_i32 = arith.constant 0 : i32
    %c0_i32_0 = arith.constant 0 : i32
    return %c0_i32, %arg1 : i32, i32
  }
  func.func @transform_4(%arg0: i32, %arg1: i32) -> (i32, i32) {
    %c0_i32 = arith.constant 0 : i32
    %c0_i32_0 = arith.constant 0 : i32
    return %arg0, %c0_i32 : i32, i32
  }
}

</mosaic_0001>

<bundles_post_ra>
// kernel: tpu_custom_call.1
= control target key start
LH: loop header
LB: loop body
LE: loop exit
PB: predicated region body
PF: predicated region fallthrough
CT: control target
= control target key end

     0   :  { %s1464_s0 = inlined_call_operand.vmem [shape: s32[32,1], index: 0, kind: input, shape index: {}]   ;;  %s1465_s1 = inlined_call_operand.vmem [shape: bf16[32,128], index: 1, kind: input, shape index: {}]   ;;  %s1466_s2 = inlined_call_operand.vmem [shape: bf16[32,128], index: 2, kind: input, shape index: {}]   ;;  %s1467_s3 = inlined_call_operand.hbm [shape: bf16[128,512], index: 3, kind: input, shape index: {}]   ;;  %s1468_s4 = inlined_call_operand.hbm [shape: f32[32,128], index: 4, kind: output, shape index: {}]  }
   0x1   :  { %1475 = sst [smem:[#allocation16_spill]] %s1467_s3 }
   0x2   :  { %9 = vsyncpa [#allocation7], 0 }
   0x3   :  { %11 = vsyncpa [#allocation7 + $0x1], 0 }
   0x4   :  { %12 = vsyncpa [#allocation8], 0 }
   0x5   :  { %14 = vsyncpa [#allocation8 + $0x1], 0  ;;  %s1159_s15 = smov 0   ;;  %s1161_s16 = smov 0  }
   0x6   :  { %s1163_s17 = smov 0   ;;  %s1165_s18 = smov 0  }
   0x7   :  { %s1167_s19 = smov 0   ;;  %s1169_s20 = smov 0  }
   0x8   :  { %s1171_s21 = smov 0   ;;  %s1173_s22 = smov 0  }
   0x9   :  { %s1175_s23 = smov 0   ;;  %s1177_s24 = smov 0  }
   0xa   :  { %s1179_s25 = smov 0  }
   0xb LB: > { %1476 = sst [smem:[#allocation12_spill]] %s1113_s23  ;;  %s753_s26 = sadd.s32 4294967295, %s1121_s25   ;;  %s1121_s25 = sphi %s1179_s25, %s20_s25   ;;  %s1117_s24 = sphi %s1177_s24, %s1493_s24   ;;  %s1113_s23 = sphi %s1175_s23, %s1492_s23   ;;  %s1109_s22 = sphi %s1173_s22, %s1491_s22   ;;  %s1105_s21 = sphi %s1171_s21, %s1490_s21   ;;  %s1101_s20 = sphi %s1169_s20, %s1499_s20   ;;  %s1097_s19 = sphi %s1167_s19, %s1498_s19   ;;  %s1093_s18 = sphi %s1165_s18, %s1497_s18   ;;  %s1089_s17 = sphi %s1163_s17, %s1496_s17   ;;  %s1085_s16 = sphi %s1161_s16, %s1495_s16   ;;  %s1081_s15 = sphi %s1159_s15, %s1494_s15  }
   0xc   : > { %1477 = sst [smem:[#allocation13_spill]] %s1117_s24  ;;  %s754_s27 = sadd.s32 4294967294, %s1121_s25  }
   0xd   : > { %s29_s28 = sadd.s32 1, %s1113_s23  ;;  %s32_s29 = sadd.s32 1, %s1117_s24 }
   0xe   : > { %p30_p0 = scmp.ge.s32.totalorder %s29_s28, 2  ;;  %s117_s30 = sadd.s32 1, %s1101_s20 }
   0xf   : > { %p124_p1 = scmp.ne.s32.totalorder %s1101_s20, %s1097_s19  ;;  %p125_p2 = scmp.eq.s32.totalorder %s1121_s25, 0 }
  0x10   : > { %s1501_s28 = smov (%p30_p0, %s29_s28), 0  ;;  %s1503_s29 = smov (!%p30_p0, %s32_s29), %s1117_s24 }
  0x11   : > { %1478 = sst [smem:[#allocation14_spill]] %s1501_s28  ;;  %s114_s5 = ssub.s32 %s1113_s23, %s1501_s28 }
  0x12   : > { %p1225_p3 = por %p125_p2, %p124_p1  ;;  %p34_p4 = scmp.ge.s32.totalorder %s1503_s29, 2 }
  0x13   : > { %p115_p5 = scmp.eq.s32.totalorder %s114_s5, 0  ;;  %p130_p6 = scmp.ne.s32.totalorder %s1097_s19, %s1093_s18 }
  0x14   : > { %p131_p7 = scmp.eq.s32.totalorder %s753_s26, 0  ;;  %s1505_s29 = smov (%p34_p4, %s1503_s29), 0 }
  0x15   : > { %1480 = sst [smem:[#allocation15_spill]] %s1505_s29  ;;  %s140_s9 = ssub.s32 %s1117_s24, %s1505_s29 }
  0x16   : > { %s1233_s7 = scalar_select %p115_p5, %s1101_s20, %s117_s30  }
  0x17   : > { %p1235_p8 = por %p131_p7, %p130_p6  ;;  %p141_p9 = scmp.eq.s32.totalorder %s140_s9, 0 }
  0x18   : > { %s143_s10 = sadd.s32 1, %s1089_s17  ;;  %p153_p10 = scmp.ne.s32.totalorder %s1089_s17, %s1085_s16 }
  0x19   : > { %p154_p11 = scmp.eq.s32.totalorder %s753_s26, 3  ;;  %p159_p13 = scmp.ne.s32.totalorder %s1085_s16, %s1081_s15 }
  0x1a   : > { %s1245_s11 = scalar_select %p141_p9, %s1089_s17, %s143_s10  }
  0x1b   : > { %p1247_p12 = por %p154_p11, %p153_p10  ;;  %p160_p0 = scmp.eq.s32.totalorder %s754_s27, 3 }
  0x1c   : > { %p825_p1 = scmp.lt.s32.totalorder %s1121_s25, 4  ;;  %s207_s13 = sand.u32 1, %s1101_s20  }
  0x1d   : > { %s1482_s12 = scalar_select %p1247_p12, 1, 0 }
  0x1e   : > { %p1255_p2 = por %p160_p0, %p159_p13  ;;  %s757_s18 = sshll.u32 %s207_s13, 7 }
  0x1f   : > { %s795_s30 = sshll.u32 %s1113_s23, 7  ;;  %s1484_s3 = sld [smem:[#allocation16_spill]] }
  0x20   : > { %s1483_s14 = scalar_select %p1255_p2, 1, 0 }
  0x21   : > { %s211_s10 = scalar_lea.vmem [#allocation6], %s757_s18  ;;  %p1267_p4 = pnand %p825_p1, %p1225_p3 }
  0x22   : > { %s218_s29 = sshll.u32 %s211_s10, 4  ;;  %s1274_s28 = scalar_lea.sflag [#allocation7], %s207_s13  ;;  %s1271_s29 = int_to_ptr.vmem [resolvable:$true] %s218_s29 }
  0x23   : > { %p971_p7 = pneg %p1267_p4 }
  0x25   : > { %s1263_s26 = scalar_lea.hbm %s1484_s3, %s795_s30  ;;  %s974_s5 = scalar_lea.hbm %s1484_s3, 4096 }
  0x26   : > { %s969_s30 = scalar_lea.hbm %s1263_s26, 2048  ;;  %p975_p3 = scmp.lt.u32.totalorder %s1263_s26, %s1484_s3 }
  0x27   : > { %p970_p6 = scmp.ne.s32.totalorder %s1263_s26, %s969_s30  ;;  %p976_p11 = scmp.lt.u32.totalorder %s974_s5, %s969_s30 }
  0x28   : > { %p978_p0 = scmp.lt.u32.totalorder %s969_s30, %s1263_s26 }
  0x29   : > { %p972_p9 = pnand %p971_p7, %p970_p6  ;;  %p977_p13 = por %p976_p11, %p975_p3 }
  0x2b   : > { %p973_p10 = pneg %p972_p9  ;;  %p979_p1 = por %p978_p0, %p977_p13 }
  0x2d   : > { %p980_p5 = pnand %p979_p1, %p973_p10 }
  0x2f   : > { %983 = shalt.err (!%p980_p5)
}
  0x30   : > { %s984_s13 = scalar_lea.vmem %s1271_s29, 2048  ;;  %s1123_s6 = smov [#allocation6]  }
  0x31   : > { %p985_p6 = scmp.ne.s32.totalorder %s1271_s29, %s984_s13  ;;  %s989_s18 = sshll.u32 %s1123_s6, 4  ;;  %s990_s18 = int_to_ptr.vmem [resolvable:$false] %s989_s18 }
  0x32   : > { %s991_s9 = scalar_lea.vmem %s990_s18, 4096  ;;  %p992_p12 = scmp.lt.s32.totalorder %s1271_s29, %s990_s18 }
  0x33   : > { %p987_p9 = pnand %p985_p6, %p971_p7  ;;  %p993_p3 = scmp.lt.s32.totalorder %s991_s9, %s984_s13 }
  0x35   : > { %p988_p2 = pneg %p987_p9  ;;  %p994_p11 = por %p993_p3, %p992_p12 }
  0x37   : > { %p995_p13 = pnand %p994_p11, %p988_p2 }
  0x39   : > { %998 = shalt.err (!%p995_p13)
}
  0x3a   : > { %s1124_s30 = smov 256   ;;  %s1125_s5 = smov 128  }
  0x3b   : > { %s1126_s10 = smov 8   ;;  %p226_p5 = scmp.lt.s32.totalorder %s1121_s25, 5 }
  0x3c   : > { %820 = dma.hbm_to_vmem [thread:$0]  (!%p1267_p4), %s1263_s26, 2048, %s1271_s29, %s1274_s28, %s1124_s30, %s1125_s5, %s1126_s10  }
  0x3d   : > { %p1486_p7 = scmp.ge.s32.totalorder %s1121_s25, 1 }
  0x3f   : > { %p227_p10 = pnand %p1486_p7, %p226_p5 }
  0x40   : > { %s232_s13 = sand.u32 (!%p227_p10), 1, %s1097_s19  }
  0x41   : > { %230 = sbr.rel (%p227_p10) target bundleno = 958 (0x3be), region = 36  ;;  %s761_s6 = sshll.u32 (!%p227_p10), %s232_s13, 7 }
  0x42   : > { %s233_s18 = scalar_lea.sflag (!%p227_p10), [#allocation7], %s232_s13  ;;  %s1306_s9 = scalar_lea.vmem (!%p227_p10), [#allocation6], %s761_s6 }
  0x48   : > { %1072 = dma.done.wait (%p1235_p8), %s233_s18, 2048  }
  0x49   : > { %1074 = vsyncadd (%p1235_p8), %s233_s18, 4294965248  ;;  %s1474_s28 = sand.u32 1, %s1085_s16   ;;  %s763_s29 = sshll.u32 %s1109_s22, 1 }
  0x4a   : > { %s762_s26 = sshll.u32 %s1474_s28, 4  ;;  %p277_p12 = scmp.lt.s32.totalorder %s763_s29, 3 }
  0x4b   : > { %s1331_s28 = scalar_lea.vmem [#allocation9], %s762_s26  ;;  %p769_p8 = scmp.ne.s32.totalorder %s1105_s21, 0 }
  0x4c   : > { %s1507_s29 = smov (!%p277_p12, %s763_s29), 3  ;;  %vm301_vm0 = vcmask (!%p769_p8), 7168   ;;  %v1127_v0 = vmov (!%p769_p8), -inf   ;;  %v1128_v1 = vmov (!%p769_p8), 0.0  }
  0x4d   : > { %s764_s27 = sshll.u32 %s1507_s29, 3  ;;  %s766_s30 = sshll.u32 %s1507_s29, 2  ;;  %302 = vst.msk [vmem:[#allocation2] sm:$0xff] (!%p769_p8), %vm301_vm0, %v1127_v0  ;;  %303 = vst.msk [vmem:[#allocation2 + $0x8] sm:$0xff] (!%p769_p8), %vm301_vm0, %v1127_v0 }
  0x4e   : > { %s1319_s13 = scalar_lea.vmem %s1464_s0, %s764_s27  ;;  %s1324_s8 = scalar_lea.vmem %s1465_s1, %s766_s30  ;;  %304 = vst.msk [vmem:[#allocation3] sm:$0xff] (!%p769_p8), %vm301_vm0, %v1128_v1  ;;  %305 = vst.msk [vmem:[#allocation3 + $0x8] sm:$0xff] (!%p769_p8), %vm301_vm0, %v1128_v1 }
  0x4f   : > { %s1329_s23 = scalar_lea.vmem %s1466_s2, %s766_s30  ;;  %300 = sbr.rel (%p769_p8) target bundleno = 86 (0x56), region = 44  ;;  %306 = vst.msk [vmem:[#allocation4] sm:$0xff] (!%p769_p8), %vm301_vm0, %v1128_v1  ;;  %307 = vst.msk [vmem:[#allocation4 + $0x8] sm:$0xff] (!%p769_p8), %vm301_vm0, %v1128_v1 }
  0x50   : > { %308 = vst.msk [vmem:[#allocation5] sm:$0xff] (!%p769_p8), %vm301_vm0, %v1128_v1  ;;  %309 = vst.msk [vmem:[#allocation5 + $0x8] sm:$0xff] (!%p769_p8), %vm301_vm0, %v1128_v1 }
  0x56 PF: > { %v926_v2 = vld [vmem:[%s1306_s9 + $0x4] ss:$8 sps:$4 sm:$0xff]   ;;  %v928_v3 = vld [vmem:[%s1306_s9] ss:$8 sps:$4 sm:$0xff]   ;;  %v1129_v4 = vmov 0   ;;  %v546_v38 = vlaneseq  ;;  %vm489_vm1 = vcmask 7168  }
  0x57   : > { %464 = vmatprep.mubr.bf16.mxu1 %v1129_v4  ;;  %454 = vmatprep.mubr.bf16.mxu0 %v1129_v4  ;;  %v929_v5 = vld [vmem:[%s1306_s9 + $0x14] ss:$8 sps:$4 sm:$0xff]   ;;  %v931_v6 = vld [vmem:[%s1306_s9 + $0x10] ss:$8 sps:$4 sm:$0xff]   ;;  %v932_v7 = vld [vmem:[%s1306_s9 + $0x24] ss:$8 sps:$4 sm:$0xff]  }
  0x58   : > { %797 = vmatprep.subr.bf16.mxu1 %v926_v2  ;;  %422 = vmatprep.subr.bf16.mxu0 %v926_v2  ;;  %v934_v8 = vld [vmem:[%s1306_s9 + $0x20] ss:$8 sps:$4 sm:$0xff]   ;;  %v935_v9 = vld [vmem:[%s1306_s9 + $0x34] ss:$8 sps:$4 sm:$0xff]   ;;  %v937_v10 = vld [vmem:[%s1306_s9 + $0x30] ss:$8 sps:$4 sm:$0xff]  }
  0x59   : > { %805 = vmatpush1.bf16.msra.mxu1 %v928_v3  ;;  %423 = vmatpush1.bf16.msra.mxu0 %v928_v3  ;;  %v938_v11 = vld [vmem:[%s1306_s9 + $0x44] ss:$8 sps:$4 sm:$0xff]   ;;  %v940_v12 = vld [vmem:[%s1306_s9 + $0x40] ss:$8 sps:$4 sm:$0xff]   ;;  %v941_v13 = vld [vmem:[%s1306_s9 + $0x54] ss:$8 sps:$4 sm:$0xff]  }
  0x5a   : > { %798 = vmatprep.subr.bf16.mxu1 %v929_v5  ;;  %424 = vmatprep.subr.bf16.mxu0 %v929_v5  ;;  %v943_v14 = vld [vmem:[%s1306_s9 + $0x50] ss:$8 sps:$4 sm:$0xff]   ;;  %v944_v15 = vld [vmem:[%s1306_s9 + $0x64] ss:$8 sps:$4 sm:$0xff]   ;;  %v946_v16 = vld [vmem:[%s1306_s9 + $0x60] ss:$8 sps:$4 sm:$0xff]  }
  0x5b   : > { %925 = vset.pattern.permute.xlu0 %v1129_v4  ;;  %924 = vset.pattern.permute.xlu1 %v1129_v4  ;;  %v947_v17 = vld [vmem:[%s1306_s9 + $0x74] ss:$8 sps:$4 sm:$0xff]   ;;  %v949_v18 = vld [vmem:[%s1306_s9 + $0x70] ss:$8 sps:$4 sm:$0xff]   ;;  %v950_v19 = vld [vmem:[%s1329_s23] sm:$0xff]   ;;  %v547_v42 = vand.u32 127, %v546_v38 }
  0x5c   : > { %v951_v20 = vld [vmem:[%s1324_s8] sm:$0xff]   ;;  %v1364_v43 = vld [vmem:[#allocation2 + $0x8] sm:$0xff]  ;;  %s788_s3 = sshll.u32 %s1105_s21, 8  ;;  %p789_p2 = scmp.ne.s32.totalorder %s1105_s21, 1 }
  0x5d   : > { %806 = vmatpush1.bf16.msra.mxu1 %v931_v6  ;;  %425 = vmatpush1.bf16.msra.mxu0 %v931_v6  ;;  %v555_v27 = vld [vmem:[%s1319_s13] sm:$0xff]  ;;  %v548_v47 = vadd.s32 128, %v547_v42  ;;  %v550_v48 = vstv %s788_s3  ;;  %v556_v50 = vld [vmem:[%s1319_s13 + $0x8] sm:$0xff]  ;;  %v1130_v38 = vmov (!%p789_p2), 0  }
  0x5e   : > { %799 = vmatprep.subr.bf16.mxu1 %v932_v7  ;;  %426 = vmatprep.subr.bf16.mxu0 %v932_v7  ;;  %v1359_v39 = vld [vmem:[#allocation2] sm:$0xff]  ;;  %v551_v51 = vadd.s32 %v550_v48, %v547_v42 }
  0x5f   : > { %v552_v52 = vadd.s32 %v550_v48, %v548_v47 }
  0x61   : > { %807 = vmatpush1.bf16.msra.mxu1 %v934_v8  ;;  %427 = vmatpush1.bf16.msra.mxu0 %v934_v8 }
  0x62   : > { %800 = vmatprep.subr.bf16.mxu1 %v935_v9  ;;  %428 = vmatprep.subr.bf16.mxu0 %v935_v9 }
  0x65   : > { %808 = vmatpush1.bf16.msra.mxu1 %v937_v10  ;;  %429 = vmatpush1.bf16.msra.mxu0 %v937_v10 }
  0x66   : > { %801 = vmatprep.subr.bf16.mxu1 %v938_v11  ;;  %430 = vmatprep.subr.bf16.mxu0 %v938_v11 }
  0x69   : > { %809 = vmatpush1.bf16.msra.mxu1 %v940_v12  ;;  %431 = vmatpush1.bf16.msra.mxu0 %v940_v12 }
  0x6a   : > { %802 = vmatprep.subr.bf16.mxu1 %v941_v13  ;;  %432 = vmatprep.subr.bf16.mxu0 %v941_v13  ;;  %v475_v13 = vld [vmem:[#allocation5] sm:$0xff] }
  0x6d   : > { %810 = vmatpush1.bf16.msra.mxu1 %v943_v14  ;;  %433 = vmatpush1.bf16.msra.mxu0 %v943_v14 }
  0x6e   : > { %803 = vmatprep.subr.bf16.mxu1 %v944_v15  ;;  %434 = vmatprep.subr.bf16.mxu0 %v944_v15 }
  0x71   : > { %811 = vmatpush1.bf16.msra.mxu1 %v946_v16  ;;  %435 = vmatpush1.bf16.msra.mxu0 %v946_v16  ;;  %v476_v16 = vld [vmem:[#allocation5 + $0x8] sm:$0xff] }
  0x72   : > { %804 = vmatprep.subr.bf16.mxu1 %v947_v17  ;;  %436 = vmatprep.subr.bf16.mxu0 %v947_v17 }
  0x75   : > { %812 = vmatpush1.bf16.msra.mxu1 %v949_v18  ;;  %437 = vmatpush1.bf16.msra.mxu0 %v949_v18 }
  0x78   : > { %465 = vmatmul.mubr.bf16.vlgmr.msra.gmra.mrb[0].mxu1 %v950_v19  ;;  %455 = vmatmul.mubr.bf16.vlgmr.msra.gmra.mrb[0].mxu0 %v951_v20  ;;  %v553_v19 = vld [vmem:[#allocation4] sm:$0xff] }
 0x14b   : > { %v466_v21 = vpop.f32.mrb[0].mxu1  ;;  %v456_v28 = vpop.f32.mrb[0].mxu0 }
 0x14c   : > { %v468_v22 = vpop.f32.mrb[1].mxu1  ;;  %v477_v29 = vmax.f32 %v456_v28, 0.0  ;;  %v458_v30 = vpop.f32.mrb[1].mxu0 }
 0x14d   : > { %v1352_v23 = vpop.f32.mrb[2].mxu1  ;;  %v494_v24 = vmax.f32 %v466_v21, %v468_v22  ;;  %v478_v31 = vmax.f32 %v458_v30, 0.0  ;;  %v460_v32 = vpop.f32.mrb[2].mxu0 }
 0x14e   : > { %v1354_v25 = vpop.f32.mrb[3].mxu1  ;;  %v462_v33 = vpop.f32.mrb[3].mxu0  ;;  %v479_v35 = vmax.f32 %v460_v32, 0.0 }
 0x14f   : > { %495 = vmax.xlane.f32.xlu0 %v494_v24  ;;  %v497_v26 = vmax.f32 %v1352_v23, %v1354_v25  ;;  %v481_v34 = vadd.f32 %v478_v31, %v477_v29  ;;  %v480_v36 = vmax.f32 %v462_v33, 0.0  ;;  %v509_v29 = vld [vmem:[#allocation3 + $0x8] sm:$0xff] }
 0x151   : > { %v484_v37 = vadd.f32 %v480_v36, %v479_v35 }
 0x153   : > { %498 = vmax.xlane.f32.xlu0 %v497_v26 }
 0x169   : > { %558 = vperm.xlu0 %925, %v555_v27  }
 0x16d   : > { %964 = vset.pattern.permute.xlu0 (!%p789_p2), %v1130_v38 }
 0x1dc   : > { %v496_v40 = vpop.xlane.xlu0 %495 }
 0x1dd   : > { %v1362_v41 = vmax.f32 %v1359_v39, %v496_v40 }
 0x1df   : > { %v502_v44 = vsub.f32 %v1359_v39, %v1362_v41  ;;  %544 = vst.msk [vmem:[#allocation2] sm:$0xff] %vm489_vm1, %v1362_v41  ;;  %514 = vperm.xlu1 %924, %v1362_v41  }
 0x1e0   : > { %v499_v45 = vpop.xlane.xlu0 %498 }
 0x1e1   : > { %v501_v46 = vmax.f32 %v1364_v43, %v499_v45 }
 0x1e3   : > { %v503_v49 = vsub.f32 %v1364_v43, %v501_v46  ;;  %545 = vst.msk [vmem:[#allocation2 + $0x8] sm:$0xff] %vm489_vm1, %v501_v46  ;;  %519 = vperm.xlu1 %924, %v501_v46  }
 0x1e6   : > { %v585_v41 = vld [vmem:[#allocation2] sm:$0xff] (!%p789_p2) }
 0x1e7   : > { %561 = vperm.xlu1 %924, %v556_v50  }
 0x1e8   : > { %v559_v53 = vpop.permute.xlu0 %558 }
 0x1e9   : > { %vm563_vm2 = vcmp.eq.s32.totalorder %v551_v51, %v559_v53  ;;  %vm564_vm3 = vcmp.eq.s32.totalorder %v552_v52, %v559_v53 }
 0x1ea   : > { %v567_v54 = vsel %vm563_vm2, %v466_v21, 0.0  ;;  %v568_v55 = vsel %vm564_vm3, %v468_v22, 0.0 }
 0x1eb   : > { %v571_v56 = vadd.f32 %v568_v55, %v567_v54 }
 0x20b   : > { %482 = vadd.xlane.f32.xlu1 %v481_v34  ;;  %v554_v34 = vld [vmem:[#allocation4 + $0x8] sm:$0xff] }
 0x20f   : > { %485 = vadd.xlane.f32.xlu1 %v484_v37 }
 0x213   : > { %572 = vadd.xlane.f32.xlu1 %v571_v56 }
 0x25e   : > { %v515_v57 = vpop.permute.xlu1 %514 }
 0x25f   : > { %v522_v58 = vsub.f32 %v466_v21, %v515_v57  ;;  %v523_v59 = vsub.f32 %v468_v22, %v515_v57  ;;  %v504_v22 = vmul.f32 1.442695, %v502_v44  ;;  %v586_v44 = vld [vmem:[#allocation2 + $0x8] sm:$0xff] (!%p789_p2) }
 0x261   : > { %v526_v60 = vmul.f32 1.442695, %v522_v58  ;;  %v528_v61 = vmul.f32 1.442695, %v523_v59 }
 0x262   : > { %v520_v62 = vpop.permute.xlu1 %519 }
 0x263   : > { %952 = vpow2.f32 %v526_v60  ;;  %v524_v63 = vsub.f32 %v1352_v23, %v520_v62  ;;  %v525_v0 = vsub.f32 %v1354_v25, %v520_v62 }
 0x264   : > { %954 = vpow2.f32 %v528_v61 }
 0x265   : > { %v530_v1 = vmul.f32 1.442695, %v524_v63  ;;  %v532_v2 = vmul.f32 1.442695, %v525_v0 }
 0x266   : > { %v562_v3 = vpop.permute.xlu1 %561 }
 0x267   : > { %956 = vpow2.f32 %v530_v1  ;;  %vm565_vm4 = vcmp.eq.s32.totalorder %v551_v51, %v562_v3  ;;  %vm566_vm5 = vcmp.eq.s32.totalorder %v552_v52, %v562_v3 }
 0x268   : > { %958 = vpow2.f32 %v532_v2  ;;  %v569_v4 = vsel %vm565_vm4, %v1352_v23, 0.0  ;;  %v570_v5 = vsel %vm566_vm5, %v1354_v25, 0.0  ;;  %v506_v23 = vmul.f32 1.442695, %v503_v49  ;;  %v508_v25 = vld [vmem:[#allocation3] sm:$0xff] }
 0x269   : > { %v574_v6 = vadd.f32 %v570_v5, %v569_v4  ;;  %960 = vpow2.f32 %v504_v22 }
 0x26a   : > { %962 = vpow2.f32 %v506_v23 }
 0x26d   : > { %v953_v7 = vpop.eup %952 }
 0x26e   : > { %v955_v8 = vpop.eup %954 }
 0x26f   : > { %v534_v9 = vadd.f32 %v955_v8, %v953_v7 }
 0x271   : > { %v957_v10 = vpop.eup %956  ;;  %535 = vadd.xlane.f32.xlu0 %v534_v9 }
 0x272   : > { %v959_v11 = vpop.eup %958 }
 0x273   : > { %v537_v12 = vadd.f32 %v959_v11, %v957_v10  ;;  %v961_v24 = vpop.eup %960 }
 0x274   : > { %v510_v26 = vmul.f32 %v961_v24, %v508_v25  ;;  %v963_v27 = vpop.eup %962 }
 0x275   : > { %538 = vadd.xlane.f32.xlu1 %v537_v12  ;;  %v511_v31 = vmul.f32 %v963_v27, %v509_v29 }
 0x279   : > { %575 = vadd.xlane.f32.xlu1 %v574_v6 }
 0x298   : > { %v483_v14 = vpop.xlane.xlu1 %482 }
 0x299   : > { %v487_v15 = vadd.f32 %v483_v14, %v475_v13 }
 0x29b   : > { %490 = vst.msk [vmem:[#allocation5] sm:$0xff] %vm489_vm1, %v487_v15 }
 0x29c   : > { %v486_v17 = vpop.xlane.xlu1 %485 }
 0x29d   : > { %v488_v18 = vadd.f32 %v486_v17, %v476_v16 }
 0x29f   : > { %491 = vst.msk [vmem:[#allocation5 + $0x8] sm:$0xff] %vm489_vm1, %v488_v18 }
 0x2a0   : > { %v573_v20 = vpop.xlane.xlu1 %572 }
 0x2a1   : > { %v577_v21 = vadd.f32 %v573_v20, %v553_v19 }
 0x2a2   : > { %v599_v46 = vld [vmem:[#allocation5] sm:$0xff] (!%p789_p2) }
 0x2a3   : > { %579 = vst.msk [vmem:[#allocation4] sm:$0xff] %vm489_vm1, %v577_v21  ;;  %v601_v53 = vmul.f32 (!%p789_p2), 6.1035156e-05, %v599_v46 }
 0x2a6   : > { %v600_v51 = vld [vmem:[#allocation5 + $0x8] sm:$0xff] (!%p789_p2) }
 0x2a7   : > { %v602_v56 = vmul.f32 (!%p789_p2), 6.1035156e-05, %v600_v51 }
 0x2aa   : > { %v595_v45 = vld [vmem:[#allocation4] sm:$0xff] (!%p789_p2) }
 0x2fe   : > { %v536_v28 = vpop.xlane.xlu0 %535 }
 0x2ff   : > { %v540_v30 = vadd.f32 %v536_v28, %v510_v26 }
 0x301   : > { %542 = vst.msk [vmem:[#allocation3] sm:$0xff] %vm489_vm1, %v540_v30 }
 0x302   : > { %v539_v32 = vpop.xlane.xlu1 %538 }
 0x303   : > { %v541_v33 = vadd.f32 %v539_v32, %v511_v31  ;;  %584 = sbr.rel (%p789_p2) target bundleno = 931 (0x3a3), region = 48 }
 0x305   : > { %543 = vst.msk [vmem:[#allocation3 + $0x8] sm:$0xff] %vm489_vm1, %v541_v33 }
 0x306   : > { %v576_v35 = vpop.xlane.xlu1 %575 }
 0x307   : > { %v578_v36 = vadd.f32 %v576_v35, %v554_v34 }
 0x308   : > { %v587_v37 = vld [vmem:[#allocation3] sm:$0xff] (!%p789_p2) }
 0x309   : > { %580 = vst.msk [vmem:[#allocation4 + $0x8] sm:$0xff] %vm489_vm1, %v578_v36  ;;  %965 = vlog2.f32 (!%p789_p2), %v587_v37 }
 0x30c   : > { %v588_v39 = vld [vmem:[#allocation3 + $0x8] sm:$0xff] }
 0x30d   : > { %967 = vlog2.f32 %v588_v39 }
 0x310   : > { %v596_v49 = vld [vmem:[#allocation4 + $0x8] sm:$0xff] }
 0x313   : > { %v966_v40 = vpop.eup %965 }
 0x314   : > { %v590_v43 = vmul.f32 0.6931472, %v966_v40 }
 0x316   : > { %v593_v48 = vadd.f32 %v590_v43, %v585_v41 }
 0x317   : > { %v968_v42 = vpop.eup %967 }
 0x318   : > { %v592_v47 = vmul.f32 0.6931472, %v968_v42  ;;  %v597_v52 = vsub.f32 %v593_v48, %v595_v45 }
 0x31a   : > { %v594_v50 = vadd.f32 %v592_v47, %v586_v44  ;;  %v603_v55 = vmul.f32 0.015625, %v597_v52 }
 0x31c   : > { %v598_v54 = vsub.f32 %v594_v50, %v596_v49  ;;  %v605_v58 = vadd.f32 %v603_v55, %v601_v53 }
 0x31e   : > { %v604_v57 = vmul.f32 0.015625, %v598_v54  ;;  %609 = vperm.xlu0 %964, %v605_v58  }
 0x320   : > { %v606_v59 = vadd.f32 %v604_v57, %v602_v56 }
 0x322   : > { %614 = vperm.xlu0 %964, %v606_v59  }
 0x39d   : > { %v610_v60 = vpop.permute.xlu0 %609 }
 0x39e   : > { %617 = vst [vmem:[%s1331_s28] sm:$0xff] %v610_v60 }
 0x3a1   : > { %v615_v61 = vpop.permute.xlu0 %614 }
 0x3a2   : > { %618 = vst [vmem:[%s1331_s28 + $0x8] sm:$0xff] %v615_v61 }
 0x3a3 PF: > { %s796_s21 = sshll.u32 %s1109_s22, 8  ;;  %s633_s29 = sshll.u32 %s1331_s28, 4  ;;  %s1399_s29 = int_to_ptr.vmem [resolvable:$true] %s633_s29 }
 0x3a4   : > { %s1396_s9 = scalar_lea.hbm %s1468_s4, %s796_s21  ;;  %s1487_s26 = sand.u32 1, %s1085_s16  }
 0x3a5   : > { %s1403_s27 = scalar_lea.sflag [#allocation8], %s1487_s26  ;;  %s999_s30 = scalar_lea.vmem %s1399_s29, 256 }
 0x3a6   : > { %p1000_p4 = scmp.ne.s32.totalorder %s1399_s29, %s999_s30  ;;  %p1488_p0 = scmp.ne.s32.totalorder %s1482_s12, 0 }
 0x3a7   : > { %s1131_s22 = smov [#allocation9]  }
 0x3a8   : > { %p1001_p1 = pnand %p1000_p4, %p1488_p0  ;;  %s1003_s5 = sshll.u32 %s1131_s22, 4  ;;  %s1004_s5 = int_to_ptr.vmem [resolvable:$false] %s1003_s5 }
 0x3a9   : > { %s1005_s10 = scalar_lea.vmem %s1004_s5, 512  ;;  %p1006_p9 = scmp.lt.s32.totalorder %s1399_s29, %s1004_s5 }
 0x3aa   : > { %p1002_p6 = pneg %p1001_p1  ;;  %p1007_p3 = scmp.lt.s32.totalorder %s1005_s10, %s999_s30 }
 0x3ac   : > { %p1008_p11 = por %p1007_p3, %p1006_p9 }
 0x3ae   : > { %p1009_p13 = pnand %p1008_p11, %p1002_p6 }
 0x3b0   : > { %1012 = shalt.err (!%p1009_p13)
}
 0x3b1   : > { %s1013_s28 = scalar_lea.hbm %s1396_s9, 256  ;;  %s1017_s8 = scalar_lea.hbm %s1468_s4, 512 }
 0x3b2   : > { %p1014_p5 = scmp.ne.s32.totalorder %s1396_s9, %s1013_s28  ;;  %p1018_p12 = scmp.lt.u32.totalorder %s1396_s9, %s1468_s4 }
 0x3b3   : > { %p1019_p8 = scmp.lt.u32.totalorder %s1017_s8, %s1013_s28  ;;  %p1021_p4 = scmp.lt.u32.totalorder %s1013_s28, %s1396_s9 }
 0x3b4   : > { %p1015_p7 = pnand %p1014_p5, %p1488_p0 }
 0x3b5   : > { %p1020_p2 = por %p1019_p8, %p1018_p12 }
 0x3b6   : > { %p1016_p10 = pneg %p1015_p7 }
 0x3b7   : > { %p1022_p1 = por %p1021_p4, %p1020_p2 }
 0x3b9   : > { %p1023_p6 = pnand %p1022_p1, %p1016_p10 }
 0x3bb   : > { %1026 = shalt.err (!%p1023_p6)
}
 0x3bc   : > { %s1132_s21 = smov 128   ;;  %s1133_s23 = smov 8  }
 0x3bd   : > { %815 = dma.vmem_to_hbm [thread:$0]  (%p1488_p0), %s1399_s29, 256, %s1396_s9, %s1403_s27, %s1132_s21, %s1132_s21, %s1133_s23  }
 0x3be PF: > { %p826_p9 = scmp.ge.s32.totalorder %s1121_s25, 2  ;;  %s648_s24 = sand.u32 1, %s1081_s15  }
 0x3bf   : > { %p1489_p3 = scmp.ne.s32.totalorder %s1483_s14, 0  ;;  %s649_s26 = scalar_lea.sflag [#allocation8], %s648_s24 }
 0x3c1   : > { %p822_p11 = pnand %p826_p9, %p1489_p3 }
 0x3c3   : > { %1076 = dma.done.wait (!%p822_p11), %s649_s26, 256  }
 0x3c4   : > { %1078 = vsyncadd (!%p822_p11), %s649_s26, 4294967040  ;;  %s20_s25 = sadd.s32 1, %s1121_s25   ;;  %s1490_s21 = sld [smem:[#allocation12_spill]] }
 0x3c5   : > { %p17_p13 = scmp.ge.s32.totalorder %s20_s25, 6   ;;  %s1491_s22 = sld [smem:[#allocation13_spill]] }
 0x3c6   : > { %s1492_s23 = sld [smem:[#allocation14_spill]]  ;;  %s1493_s24 = sld [smem:[#allocation15_spill]] }
 0x3c7   : > { %s1494_s15 = smov %s1085_s16  ;;  %s1495_s16 = smov %s1089_s17 }
 0x3c8   : > { %s1496_s17 = smov %s1245_s11  ;;  %s1497_s18 = smov %s1097_s19 }
 0x3c9   : > { %s1498_s19 = smov %s1101_s20  ;;  %s1499_s20 = smov %s1233_s7 }
 0x3ca   :  { %19 = sbr.rel (!%p17_p13) target bundleno = 11 (0xb), region = 98 }
 0x3d1   :  { %654 = vsyncpa [#allocation7], 1 }
 0x3d2   :  { %656 = vsyncpa [#allocation7 + $0x1], 1 }
 0x3d3   :  { %657 = vsyncpa [#allocation8], 1 }
 0x3d4   :  { %659 = vsyncpa [#allocation8 + $0x1], 1 }

</bundles_post_ra>
